<compile_context>
chip_gen: v7x
topology: tpu7x:2x2x1
jax: 0.10.0
libtpu: 0.0.40
codegen_flags: <defaults>
</compile_context>

<pallas_src>
import jax
import jax.numpy as jnp
from jax.experimental import pallas as pl
from jax.experimental.pallas import tpu as pltpu

_LANES = 128  # lane width: lane-dense last dim -> unmasked vst


def _round_up(a: int, b: int) -> int:
    return (a + b - 1) // b * b


def _sublane(dtype) -> int:
    # Native sublane tile: 8 rows for 4-byte, 16 for 2-byte, 32 for 1-byte.
    itemsize = jnp.dtype(dtype).itemsize
    return max(8, 32 // max(itemsize, 1))


def _tpu_tuning():
    """(max_block_rows, vmem_limit_bytes) per TPU generation."""
    try:
        kind = jax.devices()[0].device_kind.lower()
    except Exception:
        kind = ""
    if ("v5" in kind) or ("v6" in kind):
        # 128 MiB physical VMEM: 8 MiB tiles, raise the scoped-VMEM limit so
        # in+out double buffering (32 MiB) plus scratch fits comfortably.
        return 16384, 64 * 1024 * 1024
    # v7x (64 MiB VMEM / 2 TCs) and unknown parts: conservative 4 MiB tiles,
    # default 32 MiB scoped limit.
    return 8192, None


def _pick_block_rows(rows: int, sublane: int, max_block_rows: int) -> int:
    # Aim for >= 2 grid steps (v7x megacore balance) while capping tile size;
    # tiny inputs collapse to a single sublane-aligned block.
    return max(sublane, min(max_block_rows, _round_up(pl.cdiv(rows, 2), sublane)))


def _relu_kernel(x_ref, o_ref):
    # Weakly-typed zero keeps integer dtypes integer; scalar constant uses the
    # VPU immediate path (no broadcast vreg).
    o_ref[...] = jnp.maximum(x_ref[...], 0)


def _relu_2d(x2d: jax.Array, block_rows: int, vmem_limit) -> jax.Array:
    rows, lanes = x2d.shape
    grid = (pl.cdiv(rows, block_rows),)
    params = dict(dimension_semantics=("parallel",))
    if vmem_limit is not None:
        params["vmem_limit_bytes"] = vmem_limit
    return pl.pallas_call(
        _relu_kernel,
        out_shape=jax.ShapeDtypeStruct((rows, lanes), x2d.dtype),
        grid=grid,
        in_specs=[pl.BlockSpec((block_rows, lanes), lambda i: (i, 0))],
        out_specs=pl.BlockSpec((block_rows, lanes), lambda i: (i, 0)),
        input_output_aliases={0: 0},
        compiler_params=pltpu.CompilerParams(**params),
    )(x2d)


def model_forward(x: jax.Array) -> jax.Array:
    """Pallas equivalent of Model.forward — returns relu(x)."""
    orig_shape = x.shape
    n = x.size
    if n == 0:
        return x

    max_block_rows, vmem_limit = _tpu_tuning()
    sublane = _sublane(x.dtype)

    if n % _LANES == 0:
        # ---- no-copy fast path: reshape is metadata-only, no pad, no slice --
        rows = n // _LANES
        x2d = x.reshape(rows, _LANES)
        block_rows = _pick_block_rows(rows, sublane, max_block_rows)
        out2d = _relu_2d(x2d, block_rows, vmem_limit)
        return out2d.reshape(orig_shape)

    # ---- unaligned path: pad the tail up to a lane-dense, sublane-aligned
    # slab (relu(0) == 0, and the padding is sliced away afterwards).
    rows = _round_up(pl.cdiv(n, _LANES), sublane)
    padded = rows * _LANES
    x2d = jnp.pad(x.reshape(-1), (0, padded - n)).reshape(rows, _LANES)
    block_rows = _pick_block_rows(rows, sublane, max_block_rows)
    out2d = _relu_2d(x2d, block_rows, vmem_limit)
    return out2d.reshape(-1)[:n].reshape(orig_shape)


if __name__ == "__main__":
    key = jax.random.PRNGKey(0)
    x = jax.random.normal(key, (2, 3, 4), dtype=jnp.float32)

    out = jax.block_until_ready(model_forward(x))

    # reference check against plain JAX
    ref = jnp.maximum(x, 0.0)
    assert out.shape == (2, 3, 4)
    assert out.dtype == jnp.float32
    assert jnp.allclose(out, ref), "mismatch vs reference relu"

    print("KERNEL_OK")
</pallas_src>

<mosaic_0001>
module attributes {stable_mosaic.version = 11 : i64} {
  func.func @_relu_kernel(%arg0: i32, %arg1: memref<8x128xf32, #tpu.memory_space<vmem>>, %arg2: memref<8x128xf32, #tpu.memory_space<vmem>>) attributes {dimension_semantics = [#tpu.dimension_semantics<parallel>], iteration_bounds = array<i64: 1>, scalar_prefetch = 0 : i64, scratch_operands = 0 : i64, tpu.core_type = #tpu.core_type<tc>, window_params = [{transform_indices = @transform_0, window_bounds = array<i64: 8, 128>}, {transform_indices = @transform_1, window_bounds = array<i64: 8, 128>}]} {
    %c0 = arith.constant 0 : index
    %c0_0 = arith.constant 0 : index
    %0 = vector.load %arg1[%c0, %c0_0] : memref<8x128xf32, #tpu.memory_space<vmem>>, vector<8x128xf32>
    %cst = arith.constant 0.000000e+00 : f32
    %1 = vector.broadcast %cst : f32 to vector<8x128xf32>
    %2 = arith.maximumf %0, %1 : vector<8x128xf32>
    %c0_1 = arith.constant 0 : index
    %c0_2 = arith.constant 0 : index
    %3 = vector.load %arg2[%c0_1, %c0_2] : memref<8x128xf32, #tpu.memory_space<vmem>>, vector<8x128xf32>
    tpu.vector_store %arg2[%c0_1, %c0_2], %2 {strides = array<i32>} : memref<8x128xf32, #tpu.memory_space<vmem>>, vector<8x128xf32>,
    return
  }
  func.func @transform_0(%arg0: i32) -> (i32, i32) {
    %c0_i32 = arith.constant 0 : i32
    %c0_i32_0 = arith.constant 0 : i32
    return %arg0, %c0_i32 : i32, i32
  }
  func.func @transform_1(%arg0: i32) -> (i32, i32) {
    %c0_i32 = arith.constant 0 : i32
    %c0_i32_0 = arith.constant 0 : i32
    return %arg0, %c0_i32 : i32, i32
  }
}

</mosaic_0001>

<bundles_post_ra>
// kernel: tpu_custom_call.1
= control target key start
LH: loop header
LB: loop body
LE: loop exit
PB: predicated region body
PF: predicated region fallthrough
CT: control target
= control target key end

     0   :  { %6 = vsyncpa [#allocation3], 0  ;;  %s125_s0 = inlined_call_operand.hbm [shape: f32[8,128], index: 0, kind: input, shape index: {}, may-alias: {0,1}]   ;;  %s126_s1 = inlined_call_operand.hbm [shape: f32[8,128], index: 1, kind: output, shape index: {}, may-alias: {0,1}]  }
   0x1   :  { %7 = vsyncpa [#allocation4], 0  ;;  %s89_s6 = smov [#allocation2]   ;;  %s41_s10 = scalar_lea.hbm %s125_s0, 128 }
   0x2   :  { %s14_s7 = sshll.u32 %s89_s6, 4  ;;  %p42_p0 = scmp.ne.s32.totalorder %s125_s0, %s41_s10  ;;  %s15_s7 = int_to_ptr.vmem [resolvable:$true] %s14_s7 }
   0x3   :  { %p45_p1 = scmp.lt.u32.totalorder %s41_s10, %s125_s0 }
   0x5   :  { %p47_p2 = pnand %p45_p1, %p42_p0 }
   0x7   :  { %50 = shalt.err (!%p47_p2)
}
   0x8   :  { %s51_s15 = scalar_lea.vmem %s15_s7, 128  ;;  %p56_p4 = scmp.lt.s32.totalorder %s15_s7, %s15_s7 }
   0x9   :  { %p52_p3 = scmp.ne.s32.totalorder %s15_s7, %s51_s15  ;;  %p57_p5 = scmp.lt.s32.totalorder %s51_s15, %s51_s15 }
   0xb   :  { %p58_p6 = por %p57_p5, %p56_p4 }
   0xd   :  { %p59_p7 = pnand %p58_p6, %p52_p3 }
   0xf   :  { %62 = shalt.err (!%p59_p7)
}
  0x10   :  { %17 = dma.hbm_to_vmem [thread:$0]  %s125_s0, 128, %s15_s7, [#allocation3]  }
  0x11   :  { %85 = dma.done.wait [#allocation3], 128  }
  0x12   :  { %86 = vsyncadd [#allocation3], 4294967168  ;;  %s90_s18 = smov [#allocation5]   ;;  %v21_v0 = vld [vmem:[#allocation2] sm:$0xff] }
  0x13   :  { %s30_s19 = sshll.u32 %s90_s18, 4  ;;  %v22_v1 = vmax.f32 %v21_v0, 0.0  ;;  %s31_s19 = int_to_ptr.vmem [resolvable:$true] %s30_s19 }
  0x14   :  { %s63_s20 = scalar_lea.vmem %s31_s19, 128  ;;  %p68_p9 = scmp.lt.s32.totalorder %s31_s19, %s31_s19 }
  0x15   :  { %23 = vst [vmem:[#allocation5] sm:$0xff] %v22_v1  ;;  %p64_p8 = scmp.ne.s32.totalorder %s31_s19, %s63_s20  ;;  %p69_p10 = scmp.lt.s32.totalorder %s63_s20, %s63_s20 }
  0x17   :  { %p70_p11 = por %p69_p10, %p68_p9 }
  0x19   :  { %p71_p12 = pnand %p70_p11, %p64_p8 }
  0x1b   :  { %74 = shalt.err (!%p71_p12)
}
  0x1c   :  { %s75_s23 = scalar_lea.hbm %s126_s1, 128 }
  0x1d   :  { %p76_p13 = scmp.ne.s32.totalorder %s126_s1, %s75_s23  ;;  %p79_p0 = scmp.lt.u32.totalorder %s75_s23, %s126_s1 }
  0x1f   :  { %p81_p1 = pnand %p79_p0, %p76_p13 }
  0x21   :  { %84 = shalt.err (!%p81_p1)
}
  0x22   :  { %33 = dma.vmem_to_hbm [thread:$0]  %s31_s19, 128, %s126_s1, [#allocation4]  }
  0x23   :  { %87 = dma.done.wait [#allocation4], 128  }
  0x24   :  { %88 = vsyncadd [#allocation4], 4294967168 }
  0x25   :  { %37 = vsyncpa [#allocation3], 1 }
  0x26   :  { %38 = vsyncpa [#allocation4], 1 }

</bundles_post_ra>
